<compile_context>
chip_gen: v6e
topology: v6e:2x2x1
jax: 0.10.0
libtpu: 0.0.40
codegen_flags: <defaults>
</compile_context>

<pallas_src>
import jax
import jax.numpy as jnp
from jax.experimental import pallas as pl
from jax.experimental.pallas import tpu as pltpu


_MIN_PALLAS_BYTES = 1 * 1024 * 1024  # below this, plain XLA fusion wins


def _feature_dropout_kernel(mask_ref, x_ref, o_ref):
    """Hot path: one broadcast multiply per element (mask block is (R, 1))."""
    o_ref[...] = x_ref[...] * mask_ref[...]


def _vmem_capacity_bytes():
    """Per-core VMEM capacity; conservative fallback if the query fails."""
    try:
        info = pltpu.get_tpu_info()
        cap = getattr(info, "vmem_capacity_bytes", None)
        if cap:
            return int(cap)
    except Exception:
        pass
    return 64 * 1024 * 1024  # v7x per-TensorCore


def _pick_tiles(rows, n, itemsize, sub, target_block_bytes):
    """Choose (rows_tile, n_tile) so one block is ~target_block_bytes.

    Lane (last) axis: full extent if it fits the budget, else a multiple of
    128 with a ragged last block (handled by pl.cdiv grid + masked stores).
    Sublane (rows) axis: full extent if it fits, else a multiple of the
    dtype's sublane count with a ragged last block.
    """
    max_lane = max(128, (target_block_bytes // (sub * itemsize)) // 128 * 128)
    n_tile = n if n <= max_lane else max_lane

    max_rows = max(sub, (target_block_bytes // (n_tile * itemsize)) // sub * sub)
    rows_tile = rows if rows <= max_rows else max_rows
    return rows_tile, n_tile


def _feature_dropout_pallas(x2, mask2, *, donate_x=False):
    rows, n = x2.shape
    itemsize = x2.dtype.itemsize
    sub = max(8, 32 // max(1, itemsize))  # 8 (f32), 16 (bf16), 32 (int8) sublanes

    cap = _vmem_capacity_bytes()
    if cap >= 100 * 1024 * 1024:          # v5e / v6e: 128 MiB VMEM
        target_block_bytes = 16 * 1024 * 1024
        vmem_limit = min(96 * 1024 * 1024, int(cap * 0.75))
    else:                                 # v7x: 64 MiB VMEM per TensorCore
        target_block_bytes = 8 * 1024 * 1024
        vmem_limit = min(48 * 1024 * 1024, int(cap * 0.75))

    rows_tile, n_tile = _pick_tiles(rows, n, itemsize, sub, target_block_bytes)
    grid = (pl.cdiv(rows, rows_tile), pl.cdiv(n, n_tile))  # N tiles innermost

    block_bytes = rows_tile * n_tile * itemsize
    n_steps = grid[0] * grid[1]
    # Purely DMA-bound: with many short steps, go 3-deep to keep DMA saturated.
    deep = block_bytes < 2 * 1024 * 1024 and n_steps >= 8
    extra = {"pipeline_mode": pl.Buffered(3)} if deep else {}

    x_spec = pl.BlockSpec((rows_tile, n_tile), lambda r, j: (r, j), **extra)
    out_spec = pl.BlockSpec((rows_tile, n_tile), lambda r, j: (r, j), **extra)
    mask_spec = pl.BlockSpec((rows_tile, 1), lambda r, j: (r, 0))  # constant over j

    cost = pl.CostEstimate(
        flops=rows * n,
        transcendentals=0,
        bytes_accessed=2 * rows * n * itemsize + rows * itemsize,
    )

    # x is input index 1 of the pallas_call; alias it to output 0 when the
    # caller is happy to donate x (halves peak HBM footprint in production).
    aliases = {1: 0} if donate_x else {}

    return pl.pallas_call(
        _feature_dropout_kernel,
        out_shape=jax.ShapeDtypeStruct((rows, n), x2.dtype),
        grid=grid,
        in_specs=[mask_spec, x_spec],
        out_specs=out_spec,
        input_output_aliases=aliases,
        cost_estimate=cost,
        compiler_params=pltpu.CompilerParams(
            dimension_semantics=("parallel", "parallel"),
            vmem_limit_bytes=int(vmem_limit),
        ),
    )(mask2, x2)


def random_dropout(x, key, p=0.5, training=True, *, donate_x=False,
                   force_pallas=False):
    """JAX/Pallas equivalent of RandomDropout.forward (no rescaling)."""
    if not training:
        return x

    B, C, N = x.shape
    k_theta, k_mask = jax.random.split(key)

    # theta = torch.Tensor(1).uniform_(0, p)[0]
    theta = jax.random.uniform(k_theta, (), minval=0.0, maxval=p, dtype=jnp.float32)
    # One Bernoulli(keep = 1 - theta) per (b, c); kept rows are NOT rescaled.
    keep = jax.random.uniform(k_mask, (B, C, 1), dtype=jnp.float32) >= theta
    mask = keep.astype(x.dtype)

    total_bytes = x.size * x.dtype.itemsize
    if total_bytes < _MIN_PALLAS_BYTES and not force_pallas:
        # Tiny input: custom-call + grid setup overhead dominates; XLA fuses
        # the broadcast multiply perfectly at this size.
        return x * mask

    # Flatten (B, C) onto the sublane axis so channel counts that are not a
    # multiple of 8/16/32 don't waste sublanes or grid steps.
    rows = B * C
    x2 = x.reshape(rows, N)
    mask2 = mask.reshape(rows, 1)
    out2 = _feature_dropout_pallas(x2, mask2, donate_x=donate_x)
    return out2.reshape(B, C, N)


if __name__ == "__main__":
    key = jax.random.PRNGKey(0)
    k_data, k_drop = jax.random.split(key)

    B, C, N = 2, 8, 512
    x = jax.random.normal(k_data, (B, C, N), dtype=jnp.float32)

    # Exercise the Pallas path explicitly (the shape is small enough that the
    # auto path would otherwise take the tiny-input bypass).
    out = jax.block_until_ready(
        random_dropout(x, k_drop, p=0.5, training=True, force_pallas=True))
    # Bypass (plain-JAX) path with the same key must agree exactly.
    out_bypass = jax.block_until_ready(
        random_dropout(x, k_drop, p=0.5, training=True, force_pallas=False))
    eval_out = jax.block_until_ready(
        random_dropout(x, k_drop, p=0.5, training=False))

    x_np = jax.device_get(x)
    o_np = jax.device_get(out)

    ok = True
    # Every (b, c) feature row is either untouched (no rescaling) or fully
    # zeroed — never partially zeroed.
    for b in range(B):
        for c in range(C):
            if abs(o_np[b, c]).max() > 0:
                ok &= bool((o_np[b, c] == x_np[b, c]).all())
            else:
                ok &= bool((o_np[b, c] == 0).all())
    ok &= bool((jax.device_get(out_bypass) == o_np).all())
    ok &= bool((jax.device_get(eval_out) == x_np).all())

    if ok:
        print("KERNEL_OK")
    else:
        print("KERNEL_MISMATCH")
</pallas_src>

<mosaic_0001>
module attributes {stable_mosaic.version = 11 : i64} {
  func.func @_feature_dropout_kernel(%arg0: i32, %arg1: i32, %arg2: memref<16x1xf32, #tpu.memory_space<vmem>>, %arg3: memref<16x512xf32, #tpu.memory_space<vmem>>, %arg4: memref<16x512xf32, #tpu.memory_space<vmem>>) attributes {dimension_semantics = [#tpu.dimension_semantics<parallel>, #tpu.dimension_semantics<parallel>], iteration_bounds = array<i64: 1, 1>, scalar_prefetch = 0 : i64, scratch_operands = 0 : i64, tpu.core_type = #tpu.core_type<tc>, window_params = [{transform_indices = @transform_0, window_bounds = array<i64: 16, 1>}, {transform_indices = @transform_1, window_bounds = array<i64: 16, 512>}, {transform_indices = @transform_2, window_bounds = array<i64: 16, 512>}]} {
    %c0 = arith.constant 0 : index
    %c0_0 = arith.constant 0 : index
    %0 = vector.load %arg3[%c0, %c0_0] : memref<16x512xf32, #tpu.memory_space<vmem>>, vector<16x512xf32>
    %c0_1 = arith.constant 0 : index
    %c0_2 = arith.constant 0 : index
    %1 = vector.load %arg2[%c0_1, %c0_2] : memref<16x1xf32, #tpu.memory_space<vmem>>, vector<16x1xf32>
    %2 = vector.broadcast %1 : vector<16x1xf32> to vector<16x512xf32>
    %3 = arith.mulf %0, %2 : vector<16x512xf32>
    %c0_3 = arith.constant 0 : index
    %c0_4 = arith.constant 0 : index
    %4 = vector.load %arg4[%c0_3, %c0_4] : memref<16x512xf32, #tpu.memory_space<vmem>>, vector<16x512xf32>
    tpu.vector_store %arg4[%c0_3, %c0_4], %3 {strides = array<i32>} : memref<16x512xf32, #tpu.memory_space<vmem>>, vector<16x512xf32>,
    return
  }
  func.func @transform_0(%arg0: i32, %arg1: i32) -> (i32, i32) {
    %c0_i32 = arith.constant 0 : i32
    %c0_i32_0 = arith.constant 0 : i32
    return %arg0, %c0_i32 : i32, i32
  }
  func.func @transform_1(%arg0: i32, %arg1: i32) -> (i32, i32) {
    %c0_i32 = arith.constant 0 : i32
    return %arg0, %arg1 : i32, i32
  }
  func.func @transform_2(%arg0: i32, %arg1: i32) -> (i32, i32) {
    %c0_i32 = arith.constant 0 : i32
    return %arg0, %arg1 : i32, i32
  }
}

</mosaic_0001>

<bundles_post_ra>
// kernel: tpu_custom_call.1
= control target key start
LH: loop header
LB: loop body
LE: loop exit
PB: predicated region body
PF: predicated region fallthrough
CT: control target
= control target key end

     0   :  { %7 = vsyncpa [#allocation3], 0  ;;  %s167_s0 = inlined_call_operand.vmem [shape: f32[16,1], index: 0, kind: input, shape index: {}]   ;;  %s168_s1 = inlined_call_operand.hbm [shape: f32[16,512], index: 1, kind: input, shape index: {}]   ;;  %s169_s2 = inlined_call_operand.hbm [shape: f32[16,512], index: 2, kind: output, shape index: {}]  }
   0x1   :  { %8 = vsyncpa [#allocation4], 0  ;;  %s129_s9 = smov [#allocation2]  }
   0x2   :  { %s16_s10 = sshll.u32 %s129_s9, 4  ;;  %s17_s10 = int_to_ptr.vmem [resolvable:$true] %s16_s10 }
   0x3   :  { %s93_s11 = scalar_lea.vmem %s17_s10, 1024  ;;  %p98_p1 = scmp.lt.s32.totalorder %s17_s10, %s17_s10 }
   0x4   :  { %p94_p0 = scmp.ne.s32.totalorder %s17_s10, %s93_s11  ;;  %p99_p2 = scmp.lt.s32.totalorder %s93_s11, %s93_s11 }
   0x6   :  { %p100_p3 = por %p99_p2, %p98_p1 }
   0x8   :  { %p101_p4 = pnand %p100_p3, %p94_p0 }
   0xa   :  { %104 = shalt.err (!%p101_p4)
}
   0xb   :  { %s130_s12 = smov 512   ;;  %s131_s13 = smov 32  }
   0xc   :  { %22 = dma.hbm_to_vmem [thread:$0]  %s168_s1, 1024, %s17_s10, [#allocation3], %s130_s12, %s130_s12, %s131_s13  }
   0xd   :  { %125 = dma.done.wait [#allocation3], 1024  }
   0xe   :  { %126 = vsyncadd [#allocation3], 4294966272  ;;  %v132_v0 = vmov 0   ;;  %v34_v1 = vld [vmem:[%s167_s0] sm:$0xff]  ;;  %v35_v2 = vld [vmem:[%s167_s0 + $0x8] sm:$0xff]  ;;  %s133_s1 = smov [#allocation5]  }
   0xf   :  { %84 = vset.pattern.permute.xlu0 %v132_v0  ;;  %v26_v3 = vld [vmem:[#allocation2] sm:$0xff]  ;;  %v27_v4 = vld [vmem:[#allocation2 + $0x8] sm:$0xff]  ;;  %v28_v5 = vld [vmem:[#allocation2 + $0x10] sm:$0xff]  ;;  %s67_s20 = sshll.u32 %s133_s1, 4  ;;  %s68_s20 = int_to_ptr.vmem [resolvable:$true] %s67_s20 }
  0x10   :  { %38 = vperm.xlu0 %84, %v34_v1   ;;  %v29_v6 = vld [vmem:[#allocation2 + $0x18] sm:$0xff]  ;;  %v30_v12 = vld [vmem:[#allocation2 + $0x20] sm:$0xff]  ;;  %v31_v13 = vld [vmem:[#allocation2 + $0x28] sm:$0xff]  ;;  %s105_s0 = scalar_lea.vmem %s68_s20, 1024  ;;  %p110_p6 = scmp.lt.s32.totalorder %s68_s20, %s68_s20 }
  0x11   :  { %v32_v14 = vld [vmem:[#allocation2 + $0x30] sm:$0xff]  ;;  %v33_v15 = vld [vmem:[#allocation2 + $0x38] sm:$0xff]  ;;  %p106_p5 = scmp.ne.s32.totalorder %s68_s20, %s105_s0  ;;  %p111_p7 = scmp.lt.s32.totalorder %s105_s0, %s105_s0 }
  0x13   :  { %p112_p8 = por %p111_p7, %p110_p6 }
  0x14   :  { %43 = vperm.xlu0 %84, %v35_v2  }
  0x15   :  { %p113_p9 = pnand %p112_p8, %p106_p5 }
  0x8b   :  { %v39_v7 = vpop.permute.xlu0 %38 }
  0x8c   :  { %v46_v8 = vmul.f32 %v39_v7, %v26_v3  ;;  %v47_v9 = vmul.f32 %v39_v7, %v27_v4  ;;  %v48_v10 = vmul.f32 %v39_v7, %v28_v5  ;;  %v49_v11 = vmul.f32 %v39_v7, %v29_v6 }
  0x8e   :  { %54 = vst [vmem:[#allocation5] sm:$0xff] %v46_v8  ;;  %55 = vst [vmem:[#allocation5 + $0x8] sm:$0xff] %v47_v9 }
  0x8f   :  { %56 = vst [vmem:[#allocation5 + $0x10] sm:$0xff] %v48_v10  ;;  %57 = vst [vmem:[#allocation5 + $0x18] sm:$0xff] %v49_v11  ;;  %v44_v16 = vpop.permute.xlu0 %43 }
  0x90   :  { %v50_v17 = vmul.f32 %v44_v16, %v30_v12  ;;  %v51_v18 = vmul.f32 %v44_v16, %v31_v13  ;;  %v52_v19 = vmul.f32 %v44_v16, %v32_v14  ;;  %v53_v20 = vmul.f32 %v44_v16, %v33_v15 }
  0x92   :  { %58 = vst [vmem:[#allocation5 + $0x20] sm:$0xff] %v50_v17  ;;  %59 = vst [vmem:[#allocation5 + $0x28] sm:$0xff] %v51_v18 }
  0x93   :  { %60 = vst [vmem:[#allocation5 + $0x30] sm:$0xff] %v52_v19  ;;  %61 = vst [vmem:[#allocation5 + $0x38] sm:$0xff] %v53_v20 }
  0x94   :  { %116 = shalt.err (!%p113_p9)
}
  0x95   :  { %73 = dma.vmem_to_hbm [thread:$0]  %s68_s20, 1024, %s169_s2, [#allocation4], %s130_s12, %s130_s12, %s131_s13  }
  0x96   :  { %127 = dma.done.wait [#allocation4], 1024  }
  0x97   :  { %128 = vsyncadd [#allocation4], 4294966272 }
  0x98   :  { %77 = vsyncpa [#allocation3], 1 }
  0x99   :  { %78 = vsyncpa [#allocation4], 1 }

</bundles_post_ra>
